<compile_context>
chip_gen: v7x
topology: tpu7x:2x2x1
jax: 0.10.0
libtpu: 0.0.40
codegen_flags: <defaults>
</compile_context>

<pallas_src>
import functools

import jax
import jax.numpy as jnp
import numpy as np
from jax import lax
from jax.experimental import pallas as pl
from jax.experimental.pallas import tpu as pltpu


# ----------------------------------------------------------------------------
# Plain-JAX glue: Hartley transforms.
# TODO(synk): FFT/fftshift has no Pallas TPU primitive; kept as jnp.fft glue
# (rfft2-based to halve FLOPs/HBM traffic versus complex fft2 on real input).
# ----------------------------------------------------------------------------
def flip_periodic(x, axes=(-2, -1)):
    if isinstance(axes, int):
        axes = (axes,)
    return jnp.roll(jnp.flip(x, axis=axes), shift=(1,) * len(axes), axis=axes)


def dht2d_forward(x):
    """H = Re(fftshift(fft2(x))) - Im(...), for real x, via rfft2."""
    Wn = x.shape[-1]
    fr = jnp.fft.rfft2(x, norm="backward")              # (..., H, W//2+1)
    # Columns k2 = W//2+1 .. W-1 via Hermitian symmetry:
    #   F[k1, k2] = conj(F[(H-k1) % H, W-k2])
    mid = fr[..., :, 1:(Wn + 1) // 2]                   # k2 = 1 .. ceil(W/2)-1
    tail = jnp.conj(jnp.flip(mid, axis=-1))
    tail = flip_periodic(tail, axes=(-2,))               # row map (H-k1) % H
    full = jnp.concatenate([fr, tail], axis=-1)          # (..., H, W)
    full = jnp.fft.fftshift(full, axes=(-2, -1))
    return jnp.real(full) - jnp.imag(full)


def dht2d_inverse(y, scale=True):
    """(Re - Im)(fft2(ifftshift(y))) [/ (H*W)], real y, via rfft2."""
    Hn, Wn = y.shape[-2], y.shape[-1]
    z = jnp.fft.ifftshift(y, axes=(-2, -1))
    fr = jnp.fft.rfft2(z, norm="backward")               # (..., H, W//2+1)
    head = jnp.real(fr) - jnp.imag(fr)                   # k2 = 0 .. W//2
    mid = fr[..., :, 1:(Wn + 1) // 2]
    mid_ri = jnp.real(mid) + jnp.imag(mid)                # conj flips Im sign
    tail = flip_periodic(jnp.flip(mid_ri, axis=-1), axes=(-2,))
    out = jnp.concatenate([head, tail], axis=-1)
    if scale:
        out = out / (Hn * Wn)
    return out


# Full-complex version (literal translation of the PyTorch module); used only
# by the validation reference.
def dht2d_ref(x, is_inverse=False):
    if not is_inverse:
        x_ft = jnp.fft.fftshift(jnp.fft.fft2(x, norm="backward"), axes=(-2, -1))
    else:
        x_ft = jnp.fft.fft2(jnp.fft.ifftshift(x, axes=(-2, -1)), norm="backward")
    x_ht = jnp.real(x_ft) - jnp.imag(x_ft)
    if is_inverse:
        x_ht = x_ht / (x.shape[-2] * x.shape[-1])
    return x_ht


def _round_up(n, m):
    return ((n + m - 1) // m) * m


# ----------------------------------------------------------------------------
# Pallas kernel 1: Hartley spectral contraction (hot path).
#   out[b, o, m] = sum_i  x[b,i,m] * w_plus[i,o,m] + xr[b,i,m] * w_minus[i,o,m]
# with w_plus = (w + w_rev)/2, w_minus = (w - w_rev)/2 precombined outside.
# ----------------------------------------------------------------------------
def _hartley_contract_kernel(x_ref, xr_ref, wp_ref, wm_ref, o_ref):
    ci, co, tm = wp_ref.shape
    tb = x_ref.shape[0]
    # TODO(synk): only switch to an MXU dot_general formulation when Ci, Co
    # approach the MXU tile and B is large; at modest widths this op is
    # weight-HBM-bound and the VPU path is the right one.
    for b in range(tb):
        if ci <= 16:
            acc = jnp.zeros((co, tm), jnp.float32)
            for i in range(ci):
                x_i = x_ref[b, i, :].astype(jnp.float32)[None, :]
                xr_i = xr_ref[b, i, :].astype(jnp.float32)[None, :]
                acc = acc + x_i * wp_ref[i].astype(jnp.float32) \
                          + xr_i * wm_ref[i].astype(jnp.float32)
        else:
            def body(i, acc, _b=b):
                x_i = x_ref[_b, i, :].astype(jnp.float32)[None, :]
                xr_i = xr_ref[_b, i, :].astype(jnp.float32)[None, :]
                return acc + x_i * wp_ref[i].astype(jnp.float32) \
                           + xr_i * wm_ref[i].astype(jnp.float32)
            acc = lax.fori_loop(0, ci, body, jnp.zeros((co, tm), jnp.float32),
                                unroll=8)
        o_ref[b] = acc.astype(o_ref.dtype)


def hartley_contract(xs, xrs, w_plus, w_minus):
    """xs, xrs: (B, Ci, M); w_plus, w_minus: (Ci, Co, M) -> (B, Co, M)."""
    B, Ci, M = xs.shape
    Co = w_plus.shape[1]

    # Pad channel axes to full 8-sublane vregs (unmasked stores, full VPU).
    Ci_p = _round_up(Ci, 8)
    Co_p = _round_up(Co, 8)

    # Batch blocking: amortize per-grid-step overhead across tB rows.
    tB = min(B, 8)
    Bp = _round_up(B, tB)

    # Mode-tile: largest 128-multiple <= 512 such that
    #  (a) the double-buffered working set stays under ~24 MiB (v7x-safe), and
    #  (b) the (Co_p, t_m) f32 accumulator stays under ~32 vregs (~128 KiB).
    bytes_per_lane = 4 * (4 * Ci_p * Co_p + 4 * tB * Ci_p + 2 * tB * Co_p)
    t_budget = max(128, ((24 * 1024 * 1024) // bytes_per_lane) // 128 * 128)
    t_acc = max(128, (131072 // (4 * Co_p)) // 128 * 128)
    t_target = min(512, t_budget, t_acc)

    Mp = _round_up(M, 128)
    if Mp <= t_target:
        t_m = Mp                      # single mode tile
    else:
        t_m = t_target
        Mp = _round_up(Mp, t_m)       # pad up; no divisor-search fallback

    def pad3(a, d0, d1, d2):
        return jnp.pad(a, ((0, d0 - a.shape[0]), (0, d1 - a.shape[1]),
                           (0, d2 - a.shape[2])))

    # TODO(synk): on v6e/v7x, casting w_plus/w_minus to bf16 here (accumulate
    # in f32 in-kernel) halves weight HBM traffic; kept f32 for v5e safety.
    xs = pad3(xs, Bp, Ci_p, Mp)
    xrs = pad3(xrs, Bp, Ci_p, Mp)
    w_plus = pad3(w_plus, Ci_p, Co_p, Mp)
    w_minus = pad3(w_minus, Ci_p, Co_p, Mp)

    # Batch innermost: weight BlockSpecs return the same block index across
    # the inner axis, so Pallas keeps wp/wm resident (no re-DMA per batch).
    grid = (Mp // t_m, Bp // tB)

    out = pl.pallas_call(
        _hartley_contract_kernel,
        out_shape=jax.ShapeDtypeStruct((Bp, Co_p, Mp), xs.dtype),
        grid=grid,
        in_specs=[
            pl.BlockSpec((tB, Ci_p, t_m), lambda m, b: (b, 0, m)),
            pl.BlockSpec((tB, Ci_p, t_m), lambda m, b: (b, 0, m)),
            pl.BlockSpec((Ci_p, Co_p, t_m), lambda m, b: (0, 0, m)),
            pl.BlockSpec((Ci_p, Co_p, t_m), lambda m, b: (0, 0, m)),
        ],
        out_specs=pl.BlockSpec((tB, Co_p, t_m), lambda m, b: (b, 0, m)),
        compiler_params=pltpu.CompilerParams(
            dimension_semantics=("parallel", "arbitrary"),
            vmem_limit_bytes=48 * 1024 * 1024,
        ),
    )(xs, xrs, w_plus, w_minus)

    return out[:B, :Co, :M]


# ----------------------------------------------------------------------------
# Pallas kernel 2: fused scale + bias + ReLU epilogue (lane-dense).
#   out = max(x * scale + bias, 0), scale = 1/(H*W) folded out of dht2d_inverse
# ----------------------------------------------------------------------------
def _bias_relu_scale_kernel(x_ref, b_ref, o_ref, *, scale):
    x = x_ref[0].astype(jnp.float32)       # (Co, tHW)
    b = b_ref[...].astype(jnp.float32)     # (Co, 1) -> lane broadcast
    o_ref[0] = jnp.maximum(x * scale + b, 0.0).astype(o_ref.dtype)


def bias_relu_scale(x, bias, scale):
    B, Co, H, W = x.shape
    HW = H * W
    xf = x.reshape(B, Co, HW)
    bf = bias.reshape(Co, 1).astype(jnp.float32)

    # Lane-dense HW tile: multiple of 128 if possible, else full extent.
    if HW % 128 == 0:
        t_hw = min(HW, 4096)
        while HW % t_hw != 0:
            t_hw -= 128
    else:
        t_hw = HW
    grid = (B, HW // t_hw)

    out = pl.pallas_call(
        functools.partial(_bias_relu_scale_kernel, scale=scale),
        out_shape=jax.ShapeDtypeStruct((B, Co, HW), x.dtype),
        grid=grid,
        in_specs=[
            pl.BlockSpec((1, Co, t_hw), lambda b, t: (b, 0, t)),
            pl.BlockSpec((Co, 1), lambda b, t: (0, 0)),
        ],
        out_specs=pl.BlockSpec((1, Co, t_hw), lambda b, t: (b, 0, t)),
        compiler_params=pltpu.CompilerParams(
            dimension_semantics=("parallel", "parallel")),
    )(xf, bf)
    return out.reshape(B, Co, H, W)


# ----------------------------------------------------------------------------
# Full forward pass (matches HartleySpectralConv2d.forward with relu).
# ----------------------------------------------------------------------------
def hartley_spectral_conv2d(x, weight, bias, n_modes):
    B, Ci, H, W = x.shape
    mh, mw = n_modes
    assert H >= 2 * mh and W >= 2 * mw

    x_ht = dht2d_forward(x)

    ch, cw = H // 2, W // 2
    xs = x_ht[:, :, ch - mh:ch + mh, cw - mw:cw + mw]

    # Reversed-mode block gathered directly from x_ht (no full-resolution
    # flip_periodic pass):  x_rev[..., a, b] = x_ht[..., (H-a)%H, (W-b)%W].
    rows = (H - (ch - mh + np.arange(2 * mh))) % H
    cols = (W - (cw - mw + np.arange(2 * mw))) % W
    xrs = jnp.take(jnp.take(x_ht, rows, axis=2), cols, axis=3)

    # Precombine weights: even/odd split folded in once, outside the hot loop.
    kernel_rev = flip_periodic(weight)
    w_plus = 0.5 * (weight + kernel_rev)
    w_minus = 0.5 * (weight - kernel_rev)

    Co = weight.shape[1]
    M = (2 * mh) * (2 * mw)
    total = hartley_contract(
        xs.reshape(B, Ci, M),
        xrs.reshape(B, Ci, M),
        w_plus.reshape(Ci, Co, M),
        w_minus.reshape(Ci, Co, M),
    ).reshape(B, Co, 2 * mh, 2 * mw)

    pad_l = (W - 2 * mw) // 2
    pad_r = (W - 2 * mw) // 2 + int(W % 2 == 1)
    pad_t = (H - 2 * mh) // 2
    pad_b = (H - 2 * mh) // 2 + int(H % 2 == 1)
    total = jnp.pad(total, ((0, 0), (0, 0), (pad_t, pad_b), (pad_l, pad_r)))

    # Inverse Hartley without the 1/(H*W) scale; the scale is fused into the
    # bias+ReLU epilogue (one fewer full-tensor HBM round trip).
    out = dht2d_inverse(total, scale=False)
    out = bias_relu_scale(out, bias, 1.0 / (H * W))
    return out


# ----------------------------------------------------------------------------
# Pure-JAX reference (literal translation of the PyTorch module) for checking.
# ----------------------------------------------------------------------------
def _reference(x, weight, bias, n_modes):
    B, Ci, H, W = x.shape
    mh, mw = n_modes
    x_ht = dht2d_ref(x)
    x_rev = flip_periodic(x_ht)
    ch, cw = H // 2, W // 2
    xs = x_ht[:, :, ch - mh:ch + mh, cw - mw:cw + mw]
    xrs = x_rev[:, :, ch - mh:ch + mh, cw - mw:cw + mw]
    kernel_rev = flip_periodic(weight)
    x_even = (xs + xrs) / 2
    x_odd = (xs - xrs) / 2
    total = (jnp.einsum("bixy,ioxy->boxy", x_even, weight)
             + jnp.einsum("bixy,ioxy->boxy", x_odd, kernel_rev))
    pad_l = (W - 2 * mw) // 2
    pad_r = pad_l + int(W % 2 == 1)
    pad_t = (H - 2 * mh) // 2
    pad_b = pad_t + int(H % 2 == 1)
    total = jnp.pad(total, ((0, 0), (0, 0), (pad_t, pad_b), (pad_l, pad_r)))
    out = dht2d_ref(total, is_inverse=True)
    out = out + bias[None, :, :, :]
    return jnp.maximum(out, 0.0)


if __name__ == "__main__":
    B, Ci, Co, H, W = 2, 4, 4, 16, 16
    n_modes = (4, 4)
    mh, mw = n_modes

    key = jax.random.PRNGKey(0)
    kx, kw, kb = jax.random.split(key, 3)

    x = jax.random.normal(kx, (B, Ci, H, W), dtype=jnp.float32)

    init_std = (2.0 / (Ci + Co)) ** 0.5
    weight = init_std * jax.random.normal(
        kw, (Ci, Co, 2 * mh, 2 * mw), dtype=jnp.float32)
    bias = init_std * jax.random.normal(kb, (Co, 1, 1), dtype=jnp.float32)

    out = hartley_spectral_conv2d(x, weight, bias, n_modes)
    out = jax.block_until_ready(out)

    ref = jax.block_until_ready(_reference(x, weight, bias, n_modes))
    assert out.shape == (B, Co, H, W)
    assert np.allclose(np.asarray(out), np.asarray(ref), atol=1e-3, rtol=1e-3)

    print("KERNEL_OK")
</pallas_src>

<mosaic_0001>
module attributes {stable_mosaic.version = 11 : i64} {
  func.func @_hartley_contract_kernel(%arg0: i32, %arg1: i32, %arg2: memref<2x8x128xf32, #tpu.memory_space<vmem>>, %arg3: memref<2x8x128xf32, #tpu.memory_space<vmem>>, %arg4: memref<8x8x128xf32, #tpu.memory_space<vmem>>, %arg5: memref<8x8x128xf32, #tpu.memory_space<vmem>>, %arg6: memref<2x8x128xf32, #tpu.memory_space<vmem>>) attributes {dimension_semantics = [#tpu.dimension_semantics<parallel>, #tpu.dimension_semantics<arbitrary>], iteration_bounds = array<i64: 1, 1>, scalar_prefetch = 0 : i64, scratch_operands = 0 : i64, tpu.core_type = #tpu.core_type<tc>, window_params = [{transform_indices = @transform_0, window_bounds = array<i64: 2, 8, 128>}, {transform_indices = @transform_1, window_bounds = array<i64: 2, 8, 128>}, {transform_indices = @transform_2, window_bounds = array<i64: 8, 8, 128>}, {transform_indices = @transform_3, window_bounds = array<i64: 8, 8, 128>}, {transform_indices = @transform_4, window_bounds = array<i64: 2, 8, 128>}]} {
    %cst = arith.constant 0.000000e+00 : f32
    %0 = vector.broadcast %cst : f32 to vector<8x128xf32>
    %c0 = arith.constant 0 : index
    %c0_0 = arith.constant 0 : index
    %c0_1 = arith.constant 0 : index
    %1 = vector.load %arg2[%c0, %c0_0, %c0_1] : memref<2x8x128xf32, #tpu.memory_space<vmem>>, vector<1x1x128xf32>
    %2 = vector.shape_cast %1 : vector<1x1x128xf32> to vector<128xf32>
    %3 = vector.shape_cast %2 : vector<128xf32> to vector<1x128xf32>
    %c0_2 = arith.constant 0 : index
    %c0_3 = arith.constant 0 : index
    %c0_4 = arith.constant 0 : index
    %4 = vector.load %arg3[%c0_2, %c0_3, %c0_4] : memref<2x8x128xf32, #tpu.memory_space<vmem>>, vector<1x1x128xf32>
    %5 = vector.shape_cast %4 : vector<1x1x128xf32> to vector<128xf32>
    %6 = vector.shape_cast %5 : vector<128xf32> to vector<1x128xf32>
    %c0_5 = arith.constant 0 : index
    %c0_6 = arith.constant 0 : index
    %c0_7 = arith.constant 0 : index
    %7 = vector.load %arg4[%c0_5, %c0_6, %c0_7] : memref<8x8x128xf32, #tpu.memory_space<vmem>>, vector<1x8x128xf32>
    %8 = vector.shape_cast %7 : vector<1x8x128xf32> to vector<8x128xf32>
    %9 = vector.broadcast %3 : vector<1x128xf32> to vector<8x128xf32>
    %10 = arith.mulf %9, %8 : vector<8x128xf32>
    %11 = arith.addf %0, %10 : vector<8x128xf32>
    %c0_8 = arith.constant 0 : index
    %c0_9 = arith.constant 0 : index
    %c0_10 = arith.constant 0 : index
    %12 = vector.load %arg5[%c0_8, %c0_9, %c0_10] : memref<8x8x128xf32, #tpu.memory_space<vmem>>, vector<1x8x128xf32>
    %13 = vector.shape_cast %12 : vector<1x8x128xf32> to vector<8x128xf32>
    %14 = vector.broadcast %6 : vector<1x128xf32> to vector<8x128xf32>
    %15 = arith.mulf %14, %13 : vector<8x128xf32>
    %16 = arith.addf %11, %15 : vector<8x128xf32>
    %c0_11 = arith.constant 0 : index
    %c1 = arith.constant 1 : index
    %c0_12 = arith.constant 0 : index
    %17 = vector.load %arg2[%c0_11, %c1, %c0_12] : memref<2x8x128xf32, #tpu.memory_space<vmem>>, vector<1x1x128xf32>
    %18 = vector.shape_cast %17 : vector<1x1x128xf32> to vector<128xf32>
    %19 = vector.shape_cast %18 : vector<128xf32> to vector<1x128xf32>
    %c0_13 = arith.constant 0 : index
    %c1_14 = arith.constant 1 : index
    %c0_15 = arith.constant 0 : index
    %20 = vector.load %arg3[%c0_13, %c1_14, %c0_15] : memref<2x8x128xf32, #tpu.memory_space<vmem>>, vector<1x1x128xf32>
    %21 = vector.shape_cast %20 : vector<1x1x128xf32> to vector<128xf32>
    %22 = vector.shape_cast %21 : vector<128xf32> to vector<1x128xf32>
    %c1_16 = arith.constant 1 : index
    %c0_17 = arith.constant 0 : index
    %c0_18 = arith.constant 0 : index
    %23 = vector.load %arg4[%c1_16, %c0_17, %c0_18] : memref<8x8x128xf32, #tpu.memory_space<vmem>>, vector<1x8x128xf32>
    %24 = vector.shape_cast %23 : vector<1x8x128xf32> to vector<8x128xf32>
    %25 = vector.broadcast %19 : vector<1x128xf32> to vector<8x128xf32>
    %26 = arith.mulf %25, %24 : vector<8x128xf32>
    %27 = arith.addf %16, %26 : vector<8x128xf32>
    %c1_19 = arith.constant 1 : index
    %c0_20 = arith.constant 0 : index
    %c0_21 = arith.constant 0 : index
    %28 = vector.load %arg5[%c1_19, %c0_20, %c0_21] : memref<8x8x128xf32, #tpu.memory_space<vmem>>, vector<1x8x128xf32>
    %29 = vector.shape_cast %28 : vector<1x8x128xf32> to vector<8x128xf32>
    %30 = vector.broadcast %22 : vector<1x128xf32> to vector<8x128xf32>
    %31 = arith.mulf %30, %29 : vector<8x128xf32>
    %32 = arith.addf %27, %31 : vector<8x128xf32>
    %c0_22 = arith.constant 0 : index
    %c2 = arith.constant 2 : index
    %c0_23 = arith.constant 0 : index
    %33 = vector.load %arg2[%c0_22, %c2, %c0_23] : memref<2x8x128xf32, #tpu.memory_space<vmem>>, vector<1x1x128xf32>
    %34 = vector.shape_cast %33 : vector<1x1x128xf32> to vector<128xf32>
    %35 = vector.shape_cast %34 : vector<128xf32> to vector<1x128xf32>
    %c0_24 = arith.constant 0 : index
    %c2_25 = arith.constant 2 : index
    %c0_26 = arith.constant 0 : index
    %36 = vector.load %arg3[%c0_24, %c2_25, %c0_26] : memref<2x8x128xf32, #tpu.memory_space<vmem>>, vector<1x1x128xf32>
    %37 = vector.shape_cast %36 : vector<1x1x128xf32> to vector<128xf32>
    %38 = vector.shape_cast %37 : vector<128xf32> to vector<1x128xf32>
    %c2_27 = arith.constant 2 : index
    %c0_28 = arith.constant 0 : index
    %c0_29 = arith.constant 0 : index
    %39 = vector.load %arg4[%c2_27, %c0_28, %c0_29] : memref<8x8x128xf32, #tpu.memory_space<vmem>>, vector<1x8x128xf32>
    %40 = vector.shape_cast %39 : vector<1x8x128xf32> to vector<8x128xf32>
    %41 = vector.broadcast %35 : vector<1x128xf32> to vector<8x128xf32>
    %42 = arith.mulf %41, %40 : vector<8x128xf32>
    %43 = arith.addf %32, %42 : vector<8x128xf32>
    %c2_30 = arith.constant 2 : index
    %c0_31 = arith.constant 0 : index
    %c0_32 = arith.constant 0 : index
    %44 = vector.load %arg5[%c2_30, %c0_31, %c0_32] : memref<8x8x128xf32, #tpu.memory_space<vmem>>, vector<1x8x128xf32>
    %45 = vector.shape_cast %44 : vector<1x8x128xf32> to vector<8x128xf32>
    %46 = vector.broadcast %38 : vector<1x128xf32> to vector<8x128xf32>
    %47 = arith.mulf %46, %45 : vector<8x128xf32>
    %48 = arith.addf %43, %47 : vector<8x128xf32>
    %c0_33 = arith.constant 0 : index
    %c3 = arith.constant 3 : index
    %c0_34 = arith.constant 0 : index
    %49 = vector.load %arg2[%c0_33, %c3, %c0_34] : memref<2x8x128xf32, #tpu.memory_space<vmem>>, vector<1x1x128xf32>
    %50 = vector.shape_cast %49 : vector<1x1x128xf32> to vector<128xf32>
    %51 = vector.shape_cast %50 : vector<128xf32> to vector<1x128xf32>
    %c0_35 = arith.constant 0 : index
    %c3_36 = arith.constant 3 : index
    %c0_37 = arith.constant 0 : index
    %52 = vector.load %arg3[%c0_35, %c3_36, %c0_37] : memref<2x8x128xf32, #tpu.memory_space<vmem>>, vector<1x1x128xf32>
    %53 = vector.shape_cast %52 : vector<1x1x128xf32> to vector<128xf32>
    %54 = vector.shape_cast %53 : vector<128xf32> to vector<1x128xf32>
    %c3_38 = arith.constant 3 : index
    %c0_39 = arith.constant 0 : index
    %c0_40 = arith.constant 0 : index
    %55 = vector.load %arg4[%c3_38, %c0_39, %c0_40] : memref<8x8x128xf32, #tpu.memory_space<vmem>>, vector<1x8x128xf32>
    %56 = vector.shape_cast %55 : vector<1x8x128xf32> to vector<8x128xf32>
    %57 = vector.broadcast %51 : vector<1x128xf32> to vector<8x128xf32>
    %58 = arith.mulf %57, %56 : vector<8x128xf32>
    %59 = arith.addf %48, %58 : vector<8x128xf32>
    %c3_41 = arith.constant 3 : index
    %c0_42 = arith.constant 0 : index
    %c0_43 = arith.constant 0 : index
    %60 = vector.load %arg5[%c3_41, %c0_42, %c0_43] : memref<8x8x128xf32, #tpu.memory_space<vmem>>, vector<1x8x128xf32>
    %61 = vector.shape_cast %60 : vector<1x8x128xf32> to vector<8x128xf32>
    %62 = vector.broadcast %54 : vector<1x128xf32> to vector<8x128xf32>
    %63 = arith.mulf %62, %61 : vector<8x128xf32>
    %64 = arith.addf %59, %63 : vector<8x128xf32>
    %c0_44 = arith.constant 0 : index
    %c4 = arith.constant 4 : index
    %c0_45 = arith.constant 0 : index
    %65 = vector.load %arg2[%c0_44, %c4, %c0_45] : memref<2x8x128xf32, #tpu.memory_space<vmem>>, vector<1x1x128xf32>
    %66 = vector.shape_cast %65 : vector<1x1x128xf32> to vector<128xf32>
    %67 = vector.shape_cast %66 : vector<128xf32> to vector<1x128xf32>
    %c0_46 = arith.constant 0 : index
    %c4_47 = arith.constant 4 : index
    %c0_48 = arith.constant 0 : index
    %68 = vector.load %arg3[%c0_46, %c4_47, %c0_48] : memref<2x8x128xf32, #tpu.memory_space<vmem>>, vector<1x1x128xf32>
    %69 = vector.shape_cast %68 : vector<1x1x128xf32> to vector<128xf32>
    %70 = vector.shape_cast %69 : vector<128xf32> to vector<1x128xf32>
    %c4_49 = arith.constant 4 : index
    %c0_50 = arith.constant 0 : index
    %c0_51 = arith.constant 0 : index
    %71 = vector.load %arg4[%c4_49, %c0_50, %c0_51] : memref<8x8x128xf32, #tpu.memory_space<vmem>>, vector<1x8x128xf32>
    %72 = vector.shape_cast %71 : vector<1x8x128xf32> to vector<8x128xf32>
    %73 = vector.broadcast %67 : vector<1x128xf32> to vector<8x128xf32>
    %74 = arith.mulf %73, %72 : vector<8x128xf32>
    %75 = arith.addf %64, %74 : vector<8x128xf32>
    %c4_52 = arith.constant 4 : index
    %c0_53 = arith.constant 0 : index
    %c0_54 = arith.constant 0 : index
    %76 = vector.load %arg5[%c4_52, %c0_53, %c0_54] : memref<8x8x128xf32, #tpu.memory_space<vmem>>, vector<1x8x128xf32>
    %77 = vector.shape_cast %76 : vector<1x8x128xf32> to vector<8x128xf32>
    %78 = vector.broadcast %70 : vector<1x128xf32> to vector<8x128xf32>
    %79 = arith.mulf %78, %77 : vector<8x128xf32>
    %80 = arith.addf %75, %79 : vector<8x128xf32>
    %c0_55 = arith.constant 0 : index
    %c5 = arith.constant 5 : index
    %c0_56 = arith.constant 0 : index
    %81 = vector.load %arg2[%c0_55, %c5, %c0_56] : memref<2x8x128xf32, #tpu.memory_space<vmem>>, vector<1x1x128xf32>
    %82 = vector.shape_cast %81 : vector<1x1x128xf32> to vector<128xf32>
    %83 = vector.shape_cast %82 : vector<128xf32> to vector<1x128xf32>
    %c0_57 = arith.constant 0 : index
    %c5_58 = arith.constant 5 : index
    %c0_59 = arith.constant 0 : index
    %84 = vector.load %arg3[%c0_57, %c5_58, %c0_59] : memref<2x8x128xf32, #tpu.memory_space<vmem>>, vector<1x1x128xf32>
    %85 = vector.shape_cast %84 : vector<1x1x128xf32> to vector<128xf32>
    %86 = vector.shape_cast %85 : vector<128xf32> to vector<1x128xf32>
    %c5_60 = arith.constant 5 : index
    %c0_61 = arith.constant 0 : index
    %c0_62 = arith.constant 0 : index
    %87 = vector.load %arg4[%c5_60, %c0_61, %c0_62] : memref<8x8x128xf32, #tpu.memory_space<vmem>>, vector<1x8x128xf32>
    %88 = vector.shape_cast %87 : vector<1x8x128xf32> to vector<8x128xf32>
    %89 = vector.broadcast %83 : vector<1x128xf32> to vector<8x128xf32>
    %90 = arith.mulf %89, %88 : vector<8x128xf32>
    %91 = arith.addf %80, %90 : vector<8x128xf32>
    %c5_63 = arith.constant 5 : index
    %c0_64 = arith.constant 0 : index
    %c0_65 = arith.constant 0 : index
    %92 = vector.load %arg5[%c5_63, %c0_64, %c0_65] : memref<8x8x128xf32, #tpu.memory_space<vmem>>, vector<1x8x128xf32>
    %93 = vector.shape_cast %92 : vector<1x8x128xf32> to vector<8x128xf32>
    %94 = vector.broadcast %86 : vector<1x128xf32> to vector<8x128xf32>
    %95 = arith.mulf %94, %93 : vector<8x128xf32>
    %96 = arith.addf %91, %95 : vector<8x128xf32>
    %c0_66 = arith.constant 0 : index
    %c6 = arith.constant 6 : index
    %c0_67 = arith.constant 0 : index
    %97 = vector.load %arg2[%c0_66, %c6, %c0_67] : memref<2x8x128xf32, #tpu.memory_space<vmem>>, vector<1x1x128xf32>
    %98 = vector.shape_cast %97 : vector<1x1x128xf32> to vector<128xf32>
    %99 = vector.shape_cast %98 : vector<128xf32> to vector<1x128xf32>
    %c0_68 = arith.constant 0 : index
    %c6_69 = arith.constant 6 : index
    %c0_70 = arith.constant 0 : index
    %100 = vector.load %arg3[%c0_68, %c6_69, %c0_70] : memref<2x8x128xf32, #tpu.memory_space<vmem>>, vector<1x1x128xf32>
    %101 = vector.shape_cast %100 : vector<1x1x128xf32> to vector<128xf32>
    %102 = vector.shape_cast %101 : vector<128xf32> to vector<1x128xf32>
    %c6_71 = arith.constant 6 : index
    %c0_72 = arith.constant 0 : index
    %c0_73 = arith.constant 0 : index
    %103 = vector.load %arg4[%c6_71, %c0_72, %c0_73] : memref<8x8x128xf32, #tpu.memory_space<vmem>>, vector<1x8x128xf32>
    %104 = vector.shape_cast %103 : vector<1x8x128xf32> to vector<8x128xf32>
    %105 = vector.broadcast %99 : vector<1x128xf32> to vector<8x128xf32>
    %106 = arith.mulf %105, %104 : vector<8x128xf32>
    %107 = arith.addf %96, %106 : vector<8x128xf32>
    %c6_74 = arith.constant 6 : index
    %c0_75 = arith.constant 0 : index
    %c0_76 = arith.constant 0 : index
    %108 = vector.load %arg5[%c6_74, %c0_75, %c0_76] : memref<8x8x128xf32, #tpu.memory_space<vmem>>, vector<1x8x128xf32>
    %109 = vector.shape_cast %108 : vector<1x8x128xf32> to vector<8x128xf32>
    %110 = vector.broadcast %102 : vector<1x128xf32> to vector<8x128xf32>
    %111 = arith.mulf %110, %109 : vector<8x128xf32>
    %112 = arith.addf %107, %111 : vector<8x128xf32>
    %c0_77 = arith.constant 0 : index
    %c7 = arith.constant 7 : index
    %c0_78 = arith.constant 0 : index
    %113 = vector.load %arg2[%c0_77, %c7, %c0_78] : memref<2x8x128xf32, #tpu.memory_space<vmem>>, vector<1x1x128xf32>
    %114 = vector.shape_cast %113 : vector<1x1x128xf32> to vector<128xf32>
    %115 = vector.shape_cast %114 : vector<128xf32> to vector<1x128xf32>
    %c0_79 = arith.constant 0 : index
    %c7_80 = arith.constant 7 : index
    %c0_81 = arith.constant 0 : index
    %116 = vector.load %arg3[%c0_79, %c7_80, %c0_81] : memref<2x8x128xf32, #tpu.memory_space<vmem>>, vector<1x1x128xf32>
    %117 = vector.shape_cast %116 : vector<1x1x128xf32> to vector<128xf32>
    %118 = vector.shape_cast %117 : vector<128xf32> to vector<1x128xf32>
    %c7_82 = arith.constant 7 : index
    %c0_83 = arith.constant 0 : index
    %c0_84 = arith.constant 0 : index
    %119 = vector.load %arg4[%c7_82, %c0_83, %c0_84] : memref<8x8x128xf32, #tpu.memory_space<vmem>>, vector<1x8x128xf32>
    %120 = vector.shape_cast %119 : vector<1x8x128xf32> to vector<8x128xf32>
    %121 = vector.broadcast %115 : vector<1x128xf32> to vector<8x128xf32>
    %122 = arith.mulf %121, %120 : vector<8x128xf32>
    %123 = arith.addf %112, %122 : vector<8x128xf32>
    %c7_85 = arith.constant 7 : index
    %c0_86 = arith.constant 0 : index
    %c0_87 = arith.constant 0 : index
    %124 = vector.load %arg5[%c7_85, %c0_86, %c0_87] : memref<8x8x128xf32, #tpu.memory_space<vmem>>, vector<1x8x128xf32>
    %125 = vector.shape_cast %124 : vector<1x8x128xf32> to vector<8x128xf32>
    %126 = vector.broadcast %118 : vector<1x128xf32> to vector<8x128xf32>
    %127 = arith.mulf %126, %125 : vector<8x128xf32>
    %128 = arith.addf %123, %127 : vector<8x128xf32>
    %c0_88 = arith.constant 0 : index
    %c0_89 = arith.constant 0 : index
    %c0_90 = arith.constant 0 : index
    %129 = vector.load %arg6[%c0_88, %c0_89, %c0_90] : memref<2x8x128xf32, #tpu.memory_space<vmem>>, vector<1x8x128xf32>
    %130 = vector.shape_cast %129 : vector<1x8x128xf32> to vector<8x128xf32>
    %131 = vector.shape_cast %128 : vector<8x128xf32> to vector<1x8x128xf32>
    tpu.vector_store %arg6[%c0_88, %c0_89, %c0_90], %131 {strides = array<i32>} : memref<2x8x128xf32, #tpu.memory_space<vmem>>, vector<1x8x128xf32>,
    %cst_91 = arith.constant 0.000000e+00 : f32
    %132 = vector.broadcast %cst_91 : f32 to vector<8x128xf32>
    %c1_92 = arith.constant 1 : index
    %c0_93 = arith.constant 0 : index
    %c0_94 = arith.constant 0 : index
    %133 = vector.load %arg2[%c1_92, %c0_93, %c0_94] : memref<2x8x128xf32, #tpu.memory_space<vmem>>, vector<1x1x128xf32>
    %134 = vector.shape_cast %133 : vector<1x1x128xf32> to vector<128xf32>
    %135 = vector.shape_cast %134 : vector<128xf32> to vector<1x128xf32>
    %c1_95 = arith.constant 1 : index
    %c0_96 = arith.constant 0 : index
    %c0_97 = arith.constant 0 : index
    %136 = vector.load %arg3[%c1_95, %c0_96, %c0_97] : memref<2x8x128xf32, #tpu.memory_space<vmem>>, vector<1x1x128xf32>
    %137 = vector.shape_cast %136 : vector<1x1x128xf32> to vector<128xf32>
    %138 = vector.shape_cast %137 : vector<128xf32> to vector<1x128xf32>
    %c0_98 = arith.constant 0 : index
    %c0_99 = arith.constant 0 : index
    %c0_100 = arith.constant 0 : index
    %139 = vector.load %arg4[%c0_98, %c0_99, %c0_100] : memref<8x8x128xf32, #tpu.memory_space<vmem>>, vector<1x8x128xf32>
    %140 = vector.shape_cast %139 : vector<1x8x128xf32> to vector<8x128xf32>
    %141 = vector.broadcast %135 : vector<1x128xf32> to vector<8x128xf32>
    %142 = arith.mulf %141, %140 : vector<8x128xf32>
    %143 = arith.addf %132, %142 : vector<8x128xf32>
    %c0_101 = arith.constant 0 : index
    %c0_102 = arith.constant 0 : index
    %c0_103 = arith.constant 0 : index
    %144 = vector.load %arg5[%c0_101, %c0_102, %c0_103] : memref<8x8x128xf32, #tpu.memory_space<vmem>>, vector<1x8x128xf32>
    %145 = vector.shape_cast %144 : vector<1x8x128xf32> to vector<8x128xf32>
    %146 = vector.broadcast %138 : vector<1x128xf32> to vector<8x128xf32>
    %147 = arith.mulf %146, %145 : vector<8x128xf32>
    %148 = arith.addf %143, %147 : vector<8x128xf32>
    %c1_104 = arith.constant 1 : index
    %c1_105 = arith.constant 1 : index
    %c0_106 = arith.constant 0 : index
    %149 = vector.load %arg2[%c1_104, %c1_105, %c0_106] : memref<2x8x128xf32, #tpu.memory_space<vmem>>, vector<1x1x128xf32>
    %150 = vector.shape_cast %149 : vector<1x1x128xf32> to vector<128xf32>
    %151 = vector.shape_cast %150 : vector<128xf32> to vector<1x128xf32>
    %c1_107 = arith.constant 1 : index
    %c1_108 = arith.constant 1 : index
    %c0_109 = arith.constant 0 : index
    %152 = vector.load %arg3[%c1_107, %c1_108, %c0_109] : memref<2x8x128xf32, #tpu.memory_space<vmem>>, vector<1x1x128xf32>
    %153 = vector.shape_cast %152 : vector<1x1x128xf32> to vector<128xf32>
    %154 = vector.shape_cast %153 : vector<128xf32> to vector<1x128xf32>
    %c1_110 = arith.constant 1 : index
    %c0_111 = arith.constant 0 : index
    %c0_112 = arith.constant 0 : index
    %155 = vector.load %arg4[%c1_110, %c0_111, %c0_112] : memref<8x8x128xf32, #tpu.memory_space<vmem>>, vector<1x8x128xf32>
    %156 = vector.shape_cast %155 : vector<1x8x128xf32> to vector<8x128xf32>
    %157 = vector.broadcast %151 : vector<1x128xf32> to vector<8x128xf32>
    %158 = arith.mulf %157, %156 : vector<8x128xf32>
    %159 = arith.addf %148, %158 : vector<8x128xf32>
    %c1_113 = arith.constant 1 : index
    %c0_114 = arith.constant 0 : index
    %c0_115 = arith.constant 0 : index
    %160 = vector.load %arg5[%c1_113, %c0_114, %c0_115] : memref<8x8x128xf32, #tpu.memory_space<vmem>>, vector<1x8x128xf32>
    %161 = vector.shape_cast %160 : vector<1x8x128xf32> to vector<8x128xf32>
    %162 = vector.broadcast %154 : vector<1x128xf32> to vector<8x128xf32>
    %163 = arith.mulf %162, %161 : vector<8x128xf32>
    %164 = arith.addf %159, %163 : vector<8x128xf32>
    %c1_116 = arith.constant 1 : index
    %c2_117 = arith.constant 2 : index
    %c0_118 = arith.constant 0 : index
    %165 = vector.load %arg2[%c1_116, %c2_117, %c0_118] : memref<2x8x128xf32, #tpu.memory_space<vmem>>, vector<1x1x128xf32>
    %166 = vector.shape_cast %165 : vector<1x1x128xf32> to vector<128xf32>
    %167 = vector.shape_cast %166 : vector<128xf32> to vector<1x128xf32>
    %c1_119 = arith.constant 1 : index
    %c2_120 = arith.constant 2 : index
    %c0_121 = arith.constant 0 : index
    %168 = vector.load %arg3[%c1_119, %c2_120, %c0_121] : memref<2x8x128xf32, #tpu.memory_space<vmem>>, vector<1x1x128xf32>
    %169 = vector.shape_cast %168 : vector<1x1x128xf32> to vector<128xf32>
    %170 = vector.shape_cast %169 : vector<128xf32> to vector<1x128xf32>
    %c2_122 = arith.constant 2 : index
    %c0_123 = arith.constant 0 : index
    %c0_124 = arith.constant 0 : index
    %171 = vector.load %arg4[%c2_122, %c0_123, %c0_124] : memref<8x8x128xf32, #tpu.memory_space<vmem>>, vector<1x8x128xf32>
    %172 = vector.shape_cast %171 : vector<1x8x128xf32> to vector<8x128xf32>
    %173 = vector.broadcast %167 : vector<1x128xf32> to vector<8x128xf32>
    %174 = arith.mulf %173, %172 : vector<8x128xf32>
    %175 = arith.addf %164, %174 : vector<8x128xf32>
    %c2_125 = arith.constant 2 : index
    %c0_126 = arith.constant 0 : index
    %c0_127 = arith.constant 0 : index
    %176 = vector.load %arg5[%c2_125, %c0_126, %c0_127] : memref<8x8x128xf32, #tpu.memory_space<vmem>>, vector<1x8x128xf32>
    %177 = vector.shape_cast %176 : vector<1x8x128xf32> to vector<8x128xf32>
    %178 = vector.broadcast %170 : vector<1x128xf32> to vector<8x128xf32>
    %179 = arith.mulf %178, %177 : vector<8x128xf32>
    %180 = arith.addf %175, %179 : vector<8x128xf32>
    %c1_128 = arith.constant 1 : index
    %c3_129 = arith.constant 3 : index
    %c0_130 = arith.constant 0 : index
    %181 = vector.load %arg2[%c1_128, %c3_129, %c0_130] : memref<2x8x128xf32, #tpu.memory_space<vmem>>, vector<1x1x128xf32>
    %182 = vector.shape_cast %181 : vector<1x1x128xf32> to vector<128xf32>
    %183 = vector.shape_cast %182 : vector<128xf32> to vector<1x128xf32>
    %c1_131 = arith.constant 1 : index
    %c3_132 = arith.constant 3 : index
    %c0_133 = arith.constant 0 : index
    %184 = vector.load %arg3[%c1_131, %c3_132, %c0_133] : memref<2x8x128xf32, #tpu.memory_space<vmem>>, vector<1x1x128xf32>
    %185 = vector.shape_cast %184 : vector<1x1x128xf32> to vector<128xf32>
    %186 = vector.shape_cast %185 : vector<128xf32> to vector<1x128xf32>
    %c3_134 = arith.constant 3 : index
    %c0_135 = arith.constant 0 : index
    %c0_136 = arith.constant 0 : index
    %187 = vector.load %arg4[%c3_134, %c0_135, %c0_136] : memref<8x8x128xf32, #tpu.memory_space<vmem>>, vector<1x8x128xf32>
    %188 = vector.shape_cast %187 : vector<1x8x128xf32> to vector<8x128xf32>
    %189 = vector.broadcast %183 : vector<1x128xf32> to vector<8x128xf32>
    %190 = arith.mulf %189, %188 : vector<8x128xf32>
    %191 = arith.addf %180, %190 : vector<8x128xf32>
    %c3_137 = arith.constant 3 : index
    %c0_138 = arith.constant 0 : index
    %c0_139 = arith.constant 0 : index
    %192 = vector.load %arg5[%c3_137, %c0_138, %c0_139] : memref<8x8x128xf32, #tpu.memory_space<vmem>>, vector<1x8x128xf32>
    %193 = vector.shape_cast %192 : vector<1x8x128xf32> to vector<8x128xf32>
    %194 = vector.broadcast %186 : vector<1x128xf32> to vector<8x128xf32>
    %195 = arith.mulf %194, %193 : vector<8x128xf32>
    %196 = arith.addf %191, %195 : vector<8x128xf32>
    %c1_140 = arith.constant 1 : index
    %c4_141 = arith.constant 4 : index
    %c0_142 = arith.constant 0 : index
    %197 = vector.load %arg2[%c1_140, %c4_141, %c0_142] : memref<2x8x128xf32, #tpu.memory_space<vmem>>, vector<1x1x128xf32>
    %198 = vector.shape_cast %197 : vector<1x1x128xf32> to vector<128xf32>
    %199 = vector.shape_cast %198 : vector<128xf32> to vector<1x128xf32>
    %c1_143 = arith.constant 1 : index
    %c4_144 = arith.constant 4 : index
    %c0_145 = arith.constant 0 : index
    %200 = vector.load %arg3[%c1_143, %c4_144, %c0_145] : memref<2x8x128xf32, #tpu.memory_space<vmem>>, vector<1x1x128xf32>
    %201 = vector.shape_cast %200 : vector<1x1x128xf32> to vector<128xf32>
    %202 = vector.shape_cast %201 : vector<128xf32> to vector<1x128xf32>
    %c4_146 = arith.constant 4 : index
    %c0_147 = arith.constant 0 : index
    %c0_148 = arith.constant 0 : index
    %203 = vector.load %arg4[%c4_146, %c0_147, %c0_148] : memref<8x8x128xf32, #tpu.memory_space<vmem>>, vector<1x8x128xf32>
    %204 = vector.shape_cast %203 : vector<1x8x128xf32> to vector<8x128xf32>
    %205 = vector.broadcast %199 : vector<1x128xf32> to vector<8x128xf32>
    %206 = arith.mulf %205, %204 : vector<8x128xf32>
    %207 = arith.addf %196, %206 : vector<8x128xf32>
    %c4_149 = arith.constant 4 : index
    %c0_150 = arith.constant 0 : index
    %c0_151 = arith.constant 0 : index
    %208 = vector.load %arg5[%c4_149, %c0_150, %c0_151] : memref<8x8x128xf32, #tpu.memory_space<vmem>>, vector<1x8x128xf32>
    %209 = vector.shape_cast %208 : vector<1x8x128xf32> to vector<8x128xf32>
    %210 = vector.broadcast %202 : vector<1x128xf32> to vector<8x128xf32>
    %211 = arith.mulf %210, %209 : vector<8x128xf32>
    %212 = arith.addf %207, %211 : vector<8x128xf32>
    %c1_152 = arith.constant 1 : index
    %c5_153 = arith.constant 5 : index
    %c0_154 = arith.constant 0 : index
    %213 = vector.load %arg2[%c1_152, %c5_153, %c0_154] : memref<2x8x128xf32, #tpu.memory_space<vmem>>, vector<1x1x128xf32>
    %214 = vector.shape_cast %213 : vector<1x1x128xf32> to vector<128xf32>
    %215 = vector.shape_cast %214 : vector<128xf32> to vector<1x128xf32>
    %c1_155 = arith.constant 1 : index
    %c5_156 = arith.constant 5 : index
    %c0_157 = arith.constant 0 : index
    %216 = vector.load %arg3[%c1_155, %c5_156, %c0_157] : memref<2x8x128xf32, #tpu.memory_space<vmem>>, vector<1x1x128xf32>
    %217 = vector.shape_cast %216 : vector<1x1x128xf32> to vector<128xf32>
    %218 = vector.shape_cast %217 : vector<128xf32> to vector<1x128xf32>
    %c5_158 = arith.constant 5 : index
    %c0_159 = arith.constant 0 : index
    %c0_160 = arith.constant 0 : index
    %219 = vector.load %arg4[%c5_158, %c0_159, %c0_160] : memref<8x8x128xf32, #tpu.memory_space<vmem>>, vector<1x8x128xf32>
    %220 = vector.shape_cast %219 : vector<1x8x128xf32> to vector<8x128xf32>
    %221 = vector.broadcast %215 : vector<1x128xf32> to vector<8x128xf32>
    %222 = arith.mulf %221, %220 : vector<8x128xf32>
    %223 = arith.addf %212, %222 : vector<8x128xf32>
    %c5_161 = arith.constant 5 : index
    %c0_162 = arith.constant 0 : index
    %c0_163 = arith.constant 0 : index
    %224 = vector.load %arg5[%c5_161, %c0_162, %c0_163] : memref<8x8x128xf32, #tpu.memory_space<vmem>>, vector<1x8x128xf32>
    %225 = vector.shape_cast %224 : vector<1x8x128xf32> to vector<8x128xf32>
    %226 = vector.broadcast %218 : vector<1x128xf32> to vector<8x128xf32>
    %227 = arith.mulf %226, %225 : vector<8x128xf32>
    %228 = arith.addf %223, %227 : vector<8x128xf32>
    %c1_164 = arith.constant 1 : index
    %c6_165 = arith.constant 6 : index
    %c0_166 = arith.constant 0 : index
    %229 = vector.load %arg2[%c1_164, %c6_165, %c0_166] : memref<2x8x128xf32, #tpu.memory_space<vmem>>, vector<1x1x128xf32>
    %230 = vector.shape_cast %229 : vector<1x1x128xf32> to vector<128xf32>
    %231 = vector.shape_cast %230 : vector<128xf32> to vector<1x128xf32>
    %c1_167 = arith.constant 1 : index
    %c6_168 = arith.constant 6 : index
    %c0_169 = arith.constant 0 : index
    %232 = vector.load %arg3[%c1_167, %c6_168, %c0_169] : memref<2x8x128xf32, #tpu.memory_space<vmem>>, vector<1x1x128xf32>
    %233 = vector.shape_cast %232 : vector<1x1x128xf32> to vector<128xf32>
    %234 = vector.shape_cast %233 : vector<128xf32> to vector<1x128xf32>
    %c6_170 = arith.constant 6 : index
    %c0_171 = arith.constant 0 : index
    %c0_172 = arith.constant 0 : index
    %235 = vector.load %arg4[%c6_170, %c0_171, %c0_172] : memref<8x8x128xf32, #tpu.memory_space<vmem>>, vector<1x8x128xf32>
    %236 = vector.shape_cast %235 : vector<1x8x128xf32> to vector<8x128xf32>
    %237 = vector.broadcast %231 : vector<1x128xf32> to vector<8x128xf32>
    %238 = arith.mulf %237, %236 : vector<8x128xf32>
    %239 = arith.addf %228, %238 : vector<8x128xf32>
    %c6_173 = arith.constant 6 : index
    %c0_174 = arith.constant 0 : index
    %c0_175 = arith.constant 0 : index
    %240 = vector.load %arg5[%c6_173, %c0_174, %c0_175] : memref<8x8x128xf32, #tpu.memory_space<vmem>>, vector<1x8x128xf32>
    %241 = vector.shape_cast %240 : vector<1x8x128xf32> to vector<8x128xf32>
    %242 = vector.broadcast %234 : vector<1x128xf32> to vector<8x128xf32>
    %243 = arith.mulf %242, %241 : vector<8x128xf32>
    %244 = arith.addf %239, %243 : vector<8x128xf32>
    %c1_176 = arith.constant 1 : index
    %c7_177 = arith.constant 7 : index
    %c0_178 = arith.constant 0 : index
    %245 = vector.load %arg2[%c1_176, %c7_177, %c0_178] : memref<2x8x128xf32, #tpu.memory_space<vmem>>, vector<1x1x128xf32>
    %246 = vector.shape_cast %245 : vector<1x1x128xf32> to vector<128xf32>
    %247 = vector.shape_cast %246 : vector<128xf32> to vector<1x128xf32>
    %c1_179 = arith.constant 1 : index
    %c7_180 = arith.constant 7 : index
    %c0_181 = arith.constant 0 : index
    %248 = vector.load %arg3[%c1_179, %c7_180, %c0_181] : memref<2x8x128xf32, #tpu.memory_space<vmem>>, vector<1x1x128xf32>
    %249 = vector.shape_cast %248 : vector<1x1x128xf32> to vector<128xf32>
    %250 = vector.shape_cast %249 : vector<128xf32> to vector<1x128xf32>
    %c7_182 = arith.constant 7 : index
    %c0_183 = arith.constant 0 : index
    %c0_184 = arith.constant 0 : index
    %251 = vector.load %arg4[%c7_182, %c0_183, %c0_184] : memref<8x8x128xf32, #tpu.memory_space<vmem>>, vector<1x8x128xf32>
    %252 = vector.shape_cast %251 : vector<1x8x128xf32> to vector<8x128xf32>
    %253 = vector.broadcast %247 : vector<1x128xf32> to vector<8x128xf32>
    %254 = arith.mulf %253, %252 : vector<8x128xf32>
    %255 = arith.addf %244, %254 : vector<8x128xf32>
    %c7_185 = arith.constant 7 : index
    %c0_186 = arith.constant 0 : index
    %c0_187 = arith.constant 0 : index
    %256 = vector.load %arg5[%c7_185, %c0_186, %c0_187] : memref<8x8x128xf32, #tpu.memory_space<vmem>>, vector<1x8x128xf32>
    %257 = vector.shape_cast %256 : vector<1x8x128xf32> to vector<8x128xf32>
    %258 = vector.broadcast %250 : vector<1x128xf32> to vector<8x128xf32>
    %259 = arith.mulf %258, %257 : vector<8x128xf32>
    %260 = arith.addf %255, %259 : vector<8x128xf32>
    %c1_188 = arith.constant 1 : index
    %c0_189 = arith.constant 0 : index
    %c0_190 = arith.constant 0 : index
    %261 = vector.load %arg6[%c1_188, %c0_189, %c0_190] : memref<2x8x128xf32, #tpu.memory_space<vmem>>, vector<1x8x128xf32>
    %262 = vector.shape_cast %261 : vector<1x8x128xf32> to vector<8x128xf32>
    %263 = vector.shape_cast %260 : vector<8x128xf32> to vector<1x8x128xf32>
    tpu.vector_store %arg6[%c1_188, %c0_189, %c0_190], %263 {strides = array<i32>} : memref<2x8x128xf32, #tpu.memory_space<vmem>>, vector<1x8x128xf32>,
    return
  }
  func.func @transform_0(%arg0: i32, %arg1: i32) -> (i32, i32, i32) {
    %c0_i32 = arith.constant 0 : i32
    %c0_i32_0 = arith.constant 0 : i32
    return %arg1, %c0_i32, %arg0 : i32, i32, i32
  }
  func.func @transform_1(%arg0: i32, %arg1: i32) -> (i32, i32, i32) {
    %c0_i32 = arith.constant 0 : i32
    %c0_i32_0 = arith.constant 0 : i32
    return %arg1, %c0_i32, %arg0 : i32, i32, i32
  }
  func.func @transform_2(%arg0: i32, %arg1: i32) -> (i32, i32, i32) {
    %c0_i32 = arith.constant 0 : i32
    %c0_i32_0 = arith.constant 0 : i32
    %c0_i32_1 = arith.constant 0 : i32
    return %c0_i32, %c0_i32_0, %arg0 : i32, i32, i32
  }
  func.func @transform_3(%arg0: i32, %arg1: i32) -> (i32, i32, i32) {
    %c0_i32 = arith.constant 0 : i32
    %c0_i32_0 = arith.constant 0 : i32
    %c0_i32_1 = arith.constant 0 : i32
    return %c0_i32, %c0_i32_0, %arg0 : i32, i32, i32
  }
  func.func @transform_4(%arg0: i32, %arg1: i32) -> (i32, i32, i32) {
    %c0_i32 = arith.constant 0 : i32
    %c0_i32_0 = arith.constant 0 : i32
    return %arg1, %c0_i32, %arg0 : i32, i32, i32
  }
}

</mosaic_0001>

<bundles_post_ra>
// kernel: tpu_custom_call.1
= control target key start
LH: loop header
LB: loop body
LE: loop exit
PB: predicated region body
PF: predicated region fallthrough
CT: control target
= control target key end

     0   :  { %9 = vsyncpa [#allocation3], 0  ;;  %s645_s0 = inlined_call_operand.hbm [shape: f32[2,8,128], index: 0, kind: input, shape index: {}]   ;;  %s646_s1 = inlined_call_operand.hbm [shape: f32[2,8,128], index: 1, kind: input, shape index: {}]   ;;  %s647_s2 = inlined_call_operand.hbm [shape: f32[8,8,128], index: 2, kind: input, shape index: {}]   ;;  %s648_s3 = inlined_call_operand.hbm [shape: f32[8,8,128], index: 3, kind: input, shape index: {}]   ;;  %s649_s4 = inlined_call_operand.hbm [shape: f32[2,8,128], index: 4, kind: output, shape index: {}]  }
   0x1   :  { %10 = vsyncpa [#allocation6], 0 }
   0x2   :  { %11 = vsyncpa [#allocation9], 0 }
   0x3   :  { %12 = vsyncpa [#allocation4], 0  ;;  %s524_s15 = smov [#allocation5]   ;;  %s525_s17 = smov [#allocation2]  }
   0x4   :  { %s30_s16 = sshll.u32 %s524_s15, 4  ;;  %s18_s18 = sshll.u32 %s525_s17, 4  ;;  %s31_s16 = int_to_ptr.vmem [resolvable:$true] %s30_s16  ;;  %s556_s18 = int_to_ptr.vmem [resolvable:$true] %s18_s18 }
   0x5   :  { %s406_s21 = scalar_lea.hbm %s646_s1, 256 }
   0x6   :  { %p407_p0 = scmp.ne.s32.totalorder %s646_s1, %s406_s21  ;;  %p410_p1 = scmp.lt.u32.totalorder %s406_s21, %s646_s1 }
   0x8   :  { %p412_p2 = pnand %p410_p1, %p407_p0 }
   0xa   :  { %415 = shalt.err (!%p412_p2)
}
   0xb   :  { %s416_s26 = scalar_lea.vmem %s31_s16, 256  ;;  %p421_p4 = scmp.lt.s32.totalorder %s31_s16, %s31_s16 }
   0xc   :  { %p417_p3 = scmp.ne.s32.totalorder %s31_s16, %s416_s26  ;;  %p422_p5 = scmp.lt.s32.totalorder %s416_s26, %s416_s26 }
   0xe   :  { %p423_p6 = por %p422_p5, %p421_p4 }
  0x10   :  { %p424_p7 = pnand %p423_p6, %p417_p3 }
  0x12   :  { %427 = shalt.err (!%p424_p7)
}
  0x13   :  { %s526_s27 = smov 128   ;;  %s527_s28 = smov 8  }
  0x14   :  { %36 = dma.hbm_to_vmem [thread:$0]  %s646_s1, 256, %s31_s16, [#allocation6], %s526_s27, %s526_s27, %s527_s28  }
  0x15   :  { %s428_s7 = scalar_lea.hbm %s645_s0, 256 }
  0x16   :  { %p429_p8 = scmp.ne.s32.totalorder %s645_s0, %s428_s7  ;;  %p432_p9 = scmp.lt.u32.totalorder %s428_s7, %s645_s0 }
  0x18   :  { %p434_p10 = pnand %p432_p9, %p429_p8 }
  0x1a   :  { %437 = shalt.err (!%p434_p10)
}
  0x1b   :  { %s438_s12 = scalar_lea.vmem %s556_s18, 256  ;;  %p443_p12 = scmp.lt.s32.totalorder %s556_s18, %s556_s18 }
  0x1c   :  { %p439_p11 = scmp.ne.s32.totalorder %s556_s18, %s438_s12  ;;  %p444_p13 = scmp.lt.s32.totalorder %s438_s12, %s438_s12 }
  0x1e   :  { %p445_p0 = por %p444_p13, %p443_p12 }
  0x20   :  { %p446_p1 = pnand %p445_p0, %p439_p11 }
  0x22   :  { %449 = shalt.err (!%p446_p1)
}
  0x23   :  { %24 = dma.hbm_to_vmem [thread:$0]  %s645_s0, 256, %s556_s18, [#allocation3], %s526_s27, %s526_s27, %s527_s28  }
  0x24   :  { %s528_s14 = smov [#allocation7]   ;;  %s529_s16 = smov [#allocation8]  }
  0x25   :  { %s42_s15 = sshll.u32 %s528_s14, 4  ;;  %s54_s17 = sshll.u32 %s529_s16, 4  ;;  %s43_s15 = int_to_ptr.vmem [resolvable:$true] %s42_s15  ;;  %s593_s17 = int_to_ptr.vmem [resolvable:$true] %s54_s17 }
  0x26   :  { %s450_s21 = scalar_lea.hbm %s647_s2, 1024 }
  0x27   :  { %p451_p2 = scmp.ne.s32.totalorder %s647_s2, %s450_s21  ;;  %p454_p3 = scmp.lt.u32.totalorder %s450_s21, %s647_s2 }
  0x29   :  { %p456_p4 = pnand %p454_p3, %p451_p2 }
  0x2b   :  { %459 = shalt.err (!%p456_p4)
}
  0x2c   :  { %s460_s0 = scalar_lea.vmem %s43_s15, 1024  ;;  %p465_p6 = scmp.lt.s32.totalorder %s43_s15, %s43_s15 }
  0x2d   :  { %p461_p5 = scmp.ne.s32.totalorder %s43_s15, %s460_s0  ;;  %p466_p7 = scmp.lt.s32.totalorder %s460_s0, %s460_s0 }
  0x2f   :  { %p467_p8 = por %p466_p7, %p465_p6 }
  0x31   :  { %p468_p9 = pnand %p467_p8, %p461_p5 }
  0x33   :  { %471 = shalt.err (!%p468_p9)
}
  0x34   :  { %48 = dma.hbm_to_vmem [thread:$0]  %s647_s2, 1024, %s43_s15, [#allocation6], %s526_s27, %s526_s27, %s527_s28  }
  0x35   :  { %s472_s5 = scalar_lea.hbm %s648_s3, 1024 }
  0x36   :  { %p473_p10 = scmp.ne.s32.totalorder %s648_s3, %s472_s5  ;;  %p476_p11 = scmp.lt.u32.totalorder %s472_s5, %s648_s3 }
  0x38   :  { %p478_p12 = pnand %p476_p11, %p473_p10 }
  0x3a   :  { %481 = shalt.err (!%p478_p12)
}
  0x3b   :  { %s482_s10 = scalar_lea.vmem %s593_s17, 1024  ;;  %p487_p0 = scmp.lt.s32.totalorder %s593_s17, %s593_s17 }
  0x3c   :  { %p483_p13 = scmp.ne.s32.totalorder %s593_s17, %s482_s10  ;;  %p488_p1 = scmp.lt.s32.totalorder %s482_s10, %s482_s10 }
  0x3e   :  { %p489_p2 = por %p488_p1, %p487_p0 }
  0x40   :  { %p490_p3 = pnand %p489_p2, %p483_p13 }
  0x42   :  { %493 = shalt.err (!%p490_p3)
}
  0x43   :  { %60 = dma.hbm_to_vmem [thread:$0]  %s648_s3, 1024, %s593_s17, [#allocation9], %s526_s27, %s526_s27, %s527_s28  }
  0x44   :  { %516 = dma.done.wait [#allocation3], 256  }
  0x45   :  { %517 = vsyncadd [#allocation3], 4294967040 }
  0x46   :  { %518 = dma.done.wait [#allocation6], 1280  }
  0x47   :  { %519 = vsyncadd [#allocation6], 4294966016 }
  0x48   :  { %520 = dma.done.wait [#allocation9], 1024  }
  0x49   :  { %521 = vsyncadd [#allocation9], 4294966272  ;;  %v367_v0 = vld [vmem:[#allocation2] ss:$0 sm:$0xff]  ;;  %v368_v1 = vld [vmem:[#allocation5] ss:$0 sm:$0xff] }
  0x4a   :  { %v75_v2 = vld [vmem:[#allocation7] sm:$0xff]  ;;  %v370_v6 = vld [vmem:[#allocation5 + $0x1] ss:$0 sm:$0xff]  ;;  %v92_v8 = vld [vmem:[#allocation7 + $0x8] sm:$0xff]  ;;  %s530_s3 = smov [#allocation10]  }
  0x4b   :  { %v80_v3 = vmul.f32 %v367_v0, %v75_v2  ;;  %v82_v4 = vld [vmem:[#allocation8] sm:$0xff]  ;;  %v100_v9 = vld [vmem:[#allocation8 + $0x8] sm:$0xff]  ;;  %v110_v12 = vld [vmem:[#allocation7 + $0x10] sm:$0xff]  ;;  %s353_s12 = sshll.u32 %s530_s3, 4  ;;  %s354_s12 = int_to_ptr.vmem [resolvable:$true] %s353_s12 }
  0x4c   :  { %v369_v5 = vld [vmem:[#allocation2 + $0x1] ss:$0 sm:$0xff]  ;;  %v87_v7 = vmul.f32 %v368_v1, %v82_v4  ;;  %v371_v11 = vld [vmem:[#allocation2 + $0x2] ss:$0 sm:$0xff]  ;;  %v105_v14 = vmul.f32 %v370_v6, %v100_v9  ;;  %v372_v15 = vld [vmem:[#allocation5 + $0x2] ss:$0 sm:$0xff]  ;;  %p499_p5 = scmp.lt.s32.totalorder %s354_s12, %s354_s12 }
  0x4d   :  { %v97_v10 = vmul.f32 %v369_v5, %v92_v8  ;;  %v118_v16 = vld [vmem:[#allocation8 + $0x10] sm:$0xff]  ;;  %v115_v18 = vmul.f32 %v371_v11, %v110_v12  ;;  %v373_v19 = vld [vmem:[#allocation2 + $0x3] ss:$0 sm:$0xff]  ;;  %v128_v20 = vld [vmem:[#allocation7 + $0x18] sm:$0xff]  ;;  %s494_s1 = scalar_lea.vmem %s354_s12, 256 }
  0x4e   :  { %v88_v13 = vadd.f32 %v87_v7, %v80_v3  ;;  %v123_v22 = vmul.f32 %v372_v15, %v118_v16  ;;  %v374_v23 = vld [vmem:[#allocation5 + $0x3] ss:$0 sm:$0xff]  ;;  %v136_v24 = vld [vmem:[#allocation8 + $0x18] sm:$0xff]  ;;  %v133_v26 = vmul.f32 %v373_v19, %v128_v20  ;;  %v375_v27 = vld [vmem:[#allocation2 + $0x4] ss:$0 sm:$0xff]  ;;  %p495_p4 = scmp.ne.s32.totalorder %s354_s12, %s494_s1  ;;  %p500_p6 = scmp.lt.s32.totalorder %s494_s1, %s494_s1 }
  0x4f   :  { %v146_v28 = vld [vmem:[#allocation7 + $0x20] sm:$0xff]  ;;  %v383_v29 = vld [vmem:[#allocation2 + $0x8] ss:$0 sm:$0xff]  ;;  %v384_v30 = vld [vmem:[#allocation5 + $0x8] ss:$0 sm:$0xff]  ;;  %v141_v35 = vmul.f32 %v374_v23, %v136_v24 }
  0x50   :  { %v98_v17 = vadd.f32 %v97_v10, %v88_v13  ;;  %v225_v31 = vmul.f32 %v383_v29, %v75_v2  ;;  %v385_v32 = vld [vmem:[#allocation2 + $0x9] ss:$0 sm:$0xff]  ;;  %v386_v33 = vld [vmem:[#allocation5 + $0x9] ss:$0 sm:$0xff]  ;;  %v232_v36 = vmul.f32 %v384_v30, %v82_v4  ;;  %v376_v38 = vld [vmem:[#allocation5 + $0x4] ss:$0 sm:$0xff]  ;;  %v151_v42 = vmul.f32 %v375_v27, %v146_v28  ;;  %p501_p7 = por %p500_p6, %p499_p5 }
  0x51   :  { %v241_v37 = vmul.f32 %v385_v32, %v92_v8  ;;  %v154_v39 = vld [vmem:[#allocation8 + $0x20] sm:$0xff]  ;;  %v387_v40 = vld [vmem:[#allocation2 + $0xa] ss:$0 sm:$0xff]  ;;  %v248_v44 = vmul.f32 %v386_v33, %v100_v9  ;;  %v388_v47 = vld [vmem:[#allocation5 + $0xa] ss:$0 sm:$0xff] }
  0x52   :  { %v106_v21 = vadd.f32 %v105_v14, %v98_v17  ;;  %v233_v43 = vadd.f32 %v232_v36, %v225_v31  ;;  %v377_v45 = vld [vmem:[#allocation2 + $0x5] ss:$0 sm:$0xff]  ;;  %v164_v46 = vld [vmem:[#allocation7 + $0x28] sm:$0xff]  ;;  %v159_v49 = vmul.f32 %v376_v38, %v154_v39  ;;  %v257_v51 = vmul.f32 %v387_v40, %v110_v12  ;;  %v378_v52 = vld [vmem:[#allocation5 + $0x5] ss:$0 sm:$0xff]  ;;  %p502_p8 = pnand %p501_p7, %p495_p4 }
  0x53   :  { %v172_v53 = vld [vmem:[#allocation8 + $0x28] sm:$0xff]  ;;  %v169_v56 = vmul.f32 %v377_v45, %v164_v46  ;;  %v264_v58 = vmul.f32 %v388_v47, %v118_v16  ;;  %v379_v59 = vld [vmem:[#allocation2 + $0x6] ss:$0 sm:$0xff]  ;;  %v182_v60 = vld [vmem:[#allocation7 + $0x30] sm:$0xff] }
  0x54   :  { %v116_v25 = vadd.f32 %v115_v18, %v106_v21  ;;  %v242_v50 = vadd.f32 %v241_v37, %v233_v43  ;;  %v389_v54 = vld [vmem:[#allocation2 + $0xb] ss:$0 sm:$0xff]  ;;  %v390_v61 = vld [vmem:[#allocation5 + $0xb] ss:$0 sm:$0xff]  ;;  %v177_v63 = vmul.f32 %v378_v52, %v172_v53  ;;  %v380_v2 = vld [vmem:[#allocation5 + $0x6] ss:$0 sm:$0xff]  ;;  %v187_v6 = vmul.f32 %v379_v59, %v182_v60 }
  0x55   :  { %v273_v1 = vmul.f32 %v389_v54, %v128_v20  ;;  %v190_v3 = vld [vmem:[#allocation8 + $0x30] sm:$0xff]  ;;  %v391_v4 = vld [vmem:[#allocation2 + $0xc] ss:$0 sm:$0xff]  ;;  %v280_v8 = vmul.f32 %v390_v61, %v136_v24  ;;  %v381_v9 = vld [vmem:[#allocation2 + $0x7] ss:$0 sm:$0xff] }
  0x56   :  { %v124_v34 = vadd.f32 %v123_v22, %v116_v25  ;;  %v249_v57 = vadd.f32 %v248_v44, %v242_v50  ;;  %v200_v10 = vld [vmem:[#allocation7 + $0x38] sm:$0xff]  ;;  %v195_v13 = vmul.f32 %v380_v2, %v190_v3  ;;  %v289_v15 = vmul.f32 %v391_v4, %v146_v28  ;;  %v382_v16 = vld [vmem:[#allocation5 + $0x7] ss:$0 sm:$0xff]  ;;  %v393_v18 = vld [vmem:[#allocation2 + $0xd] ss:$0 sm:$0xff] }
  0x57   :  { %v392_v11 = vld [vmem:[#allocation5 + $0xc] ss:$0 sm:$0xff]  ;;  %v205_v21 = vmul.f32 %v381_v9, %v200_v10  ;;  %v394_v23 = vld [vmem:[#allocation5 + $0xd] ss:$0 sm:$0xff]  ;;  %v305_v29 = vmul.f32 %v393_v18, %v164_v46  ;;  %v395_v24 = vld [vmem:[#allocation2 + $0xe] ss:$0 sm:$0xff] }
  0x58   :  { %v134_v41 = vadd.f32 %v133_v26, %v124_v34  ;;  %v258_v0 = vadd.f32 %v257_v51, %v249_v57  ;;  %v208_v17 = vld [vmem:[#allocation8 + $0x38] sm:$0xff]  ;;  %v296_v22 = vmul.f32 %v392_v11, %v154_v39  ;;  %v312_v32 = vmul.f32 %v394_v23, %v172_v53  ;;  %v397_v36 = vld [vmem:[#allocation2 + $0xf] ss:$0 sm:$0xff] }
  0x59   :  { %v213_v26 = vmul.f32 %v382_v16, %v208_v17  ;;  %v396_v33 = vld [vmem:[#allocation5 + $0xe] ss:$0 sm:$0xff]  ;;  %v321_v28 = vmul.f32 %v395_v24, %v182_v60  ;;  %v398_v40 = vld [vmem:[#allocation5 + $0xf] ss:$0 sm:$0xff]  ;;  %v337_v39 = vmul.f32 %v397_v36, %v200_v10 }
  0x5a   :  { %v142_v48 = vadd.f32 %v141_v35, %v134_v41  ;;  %v265_v7 = vadd.f32 %v264_v58, %v258_v0  ;;  %v328_v38 = vmul.f32 %v396_v33, %v190_v3  ;;  %v344_v43 = vmul.f32 %v398_v40, %v208_v17 }
  0x5c   :  { %v152_v55 = vadd.f32 %v151_v42, %v142_v48  ;;  %v274_v14 = vadd.f32 %v273_v1, %v265_v7 }
  0x5e   :  { %v160_v62 = vadd.f32 %v159_v49, %v152_v55  ;;  %v281_v20 = vadd.f32 %v280_v8, %v274_v14 }
  0x60   :  { %v170_v5 = vadd.f32 %v169_v56, %v160_v62  ;;  %v290_v27 = vadd.f32 %v289_v15, %v281_v20 }
  0x62   :  { %v178_v12 = vadd.f32 %v177_v63, %v170_v5  ;;  %v297_v31 = vadd.f32 %v296_v22, %v290_v27 }
  0x64   :  { %v188_v19 = vadd.f32 %v187_v6, %v178_v12  ;;  %v306_v35 = vadd.f32 %v305_v29, %v297_v31 }
  0x66   :  { %v196_v25 = vadd.f32 %v195_v13, %v188_v19  ;;  %v313_v37 = vadd.f32 %v312_v32, %v306_v35 }
  0x68   :  { %v206_v30 = vadd.f32 %v205_v21, %v196_v25  ;;  %v322_v41 = vadd.f32 %v321_v28, %v313_v37 }
  0x6a   :  { %v214_v34 = vadd.f32 %v213_v26, %v206_v30  ;;  %v329_v42 = vadd.f32 %v328_v38, %v322_v41 }
  0x6c   :  { %215 = vst [vmem:[#allocation10] sm:$0xff] %v214_v34  ;;  %v338_v44 = vadd.f32 %v337_v39, %v329_v42 }
  0x6e   :  { %v345_v45 = vadd.f32 %v344_v43, %v338_v44 }
  0x70   :  { %347 = vst [vmem:[#allocation10 + $0x8] sm:$0xff] %v345_v45 }
  0x71   :  { %505 = shalt.err (!%p502_p8)
}
  0x72   :  { %s506_s15 = scalar_lea.hbm %s649_s4, 256 }
  0x73   :  { %p507_p9 = scmp.ne.s32.totalorder %s649_s4, %s506_s15  ;;  %p510_p10 = scmp.lt.u32.totalorder %s506_s15, %s649_s4 }
  0x75   :  { %p512_p11 = pnand %p510_p10, %p507_p9 }
  0x77   :  { %515 = shalt.err (!%p512_p11)
}
  0x78   :  { %359 = dma.vmem_to_hbm [thread:$0]  %s354_s12, 256, %s649_s4, [#allocation4], %s526_s27, %s526_s27, %s527_s28  }
  0x79   :  { %522 = dma.done.wait [#allocation4], 256  }
  0x7a   :  { %523 = vsyncadd [#allocation4], 4294967040 }
  0x7b   :  { %363 = vsyncpa [#allocation3], 1 }
  0x7c   :  { %364 = vsyncpa [#allocation6], 1 }
  0x7d   :  { %365 = vsyncpa [#allocation9], 1 }
  0x7e   :  { %366 = vsyncpa [#allocation4], 1 }

</bundles_post_ra>
